<compile_context>
chip_gen: v7x
topology: tpu7x:2x2x1
jax: 0.10.0
libtpu: 0.0.40
codegen_flags: <defaults>
</compile_context>

<pallas_src>
from functools import partial

import jax
import jax.numpy as jnp
from jax.experimental import pallas as pl
from jax.experimental.pallas import tpu as pltpu

LANE = 128


def _round_up(x, m):
    return (x + m - 1) // m * m


def _pad2d(a, rows, cols):
    r, c = a.shape
    if (r, c) == (rows, cols):
        return a
    return jnp.zeros((rows, cols), a.dtype).at[:r, :c].set(a)


def _vmem_capacity_bytes():
    # Device query keeps one code path correct on v5e/v6e (128 MiB) and v7x (64 MiB).
    try:
        return int(pltpu.get_tpu_info().vmem_capacity_bytes)
    except Exception:
        return 64 << 20  # conservative (v7x)


def _resident_spec(shape):
    """BlockSpec for a block that never changes across grid steps (weights/biases).

    Single-buffered: with a constant index_map, a second pipeline buffer is pure
    VMEM waste (it would double the weight footprint once widths grow to ~2048).
    """
    index_map = lambda i: (0, 0)
    if hasattr(pl, "Buffered"):
        return pl.BlockSpec(shape, index_map, pipeline_mode=pl.Buffered(1))
    return pl.BlockSpec(shape, index_map)


def _mlp_kernel(x_ref, w1_ref, b1_ref, w2_ref, b2_ref, w3_ref, b3_ref, o_ref):
    # Fused hot path: 3 matmuls (bf16 in, f32 accumulate) + bias adds + 2 ReLUs.
    x = x_ref[...]  # bf16 (tb, d0) -- unpadded K; MXU handles short contraction fine.

    h1 = jnp.dot(x, w1_ref[...], preferred_element_type=jnp.float32) + b1_ref[...]
    h1 = jnp.maximum(h1, 0.0).astype(jnp.bfloat16)

    h2 = jnp.dot(h1, w2_ref[...], preferred_element_type=jnp.float32) + b2_ref[...]
    h2 = jnp.maximum(h2, 0.0).astype(jnp.bfloat16)

    h3 = jnp.dot(h2, w3_ref[...], preferred_element_type=jnp.float32) + b3_ref[...]
    o_ref[...] = h3.astype(o_ref.dtype)


def _pick_batch_tile(B, d0, p1, p2, p3, budget_bytes):
    """Largest batch tile (== B when possible) whose per-step working set fits VMEM.

    Default is a single grid step: on v5e/v6e the grid is a serial loop where each
    extra step costs ~0.35us of fixed overhead for almost nothing overlapped here,
    and on v7x a multi-step 'parallel' split duplicates weight DMA per core.
    """
    def tile_bytes(tb):
        return 2 * (tb * d0 * 2 + tb * p3 * 4) + 2 * tb * (p1 + p2 + p3) * 4

    if tile_bytes(B) <= budget_bytes or B <= 8:
        return B
    tb = B
    while tb > 8 and tb % 2 == 0 and (tb // 2) % 8 == 0:
        tb //= 2
        if tile_bytes(tb) <= budget_bytes:
            return tb
    return tb


def prepare_params(params):
    """One-time padding (feature dims -> multiples of 128) + bf16 cast of weights.

    Hoisted out of the forward so the per-call wrapper does no pad/cast work.
    """
    d0 = params["w1"].shape[0]
    d1, d2, d3 = params["w1"].shape[1], params["w2"].shape[1], params["w3"].shape[1]
    p1, p2, p3 = (_round_up(d, LANE) for d in (d1, d2, d3))
    return {
        "w1": _pad2d(params["w1"], d0, p1).astype(jnp.bfloat16),
        "b1": _pad2d(params["b1"], 1, p1).astype(jnp.float32),
        "w2": _pad2d(params["w2"], p1, p2).astype(jnp.bfloat16),
        "b2": _pad2d(params["b2"], 1, p2).astype(jnp.float32),
        "w3": _pad2d(params["w3"], p2, p3).astype(jnp.bfloat16),
        "b3": _pad2d(params["b3"], 1, p3).astype(jnp.float32),
    }


@partial(jax.jit, static_argnames=("out_features", "batch_tile"))
def linear_net_forward(x, prepared, out_features, batch_tile=None):
    """Fused forward pass of LinearNet.

    x: (B, d0) float32.  prepared: output of prepare_params().  out_features: real d3.
    """
    B, d0 = x.shape
    w1, b1, w2, b2, w3, b3 = (prepared["w1"], prepared["b1"], prepared["w2"],
                              prepared["b2"], prepared["w3"], prepared["b3"])
    p1, p2, p3 = w1.shape[1], w2.shape[1], w3.shape[1]
    assert w1.shape[0] == d0

    xp = x.astype(jnp.bfloat16)  # no feature-dim padding; block last-dim == full dim is legal

    # --- VMEM budget (weights resident; activations possibly double-buffered) ---
    cap = _vmem_capacity_bytes()
    w_bytes = (d0 * p1 + p1 * p2 + p2 * p3) * 2
    b_bytes = (p1 + p2 + p3) * 4
    resident_bytes = 2 * (w_bytes + b_bytes)  # assume worst case (double-buffered) for budget
    budget = max(cap - resident_bytes - (8 << 20), 4 << 20)

    tb = batch_tile if batch_tile is not None else _pick_batch_tile(B, d0, p1, p2, p3, budget)
    assert B % tb == 0, "batch must be divisible by batch_tile"
    assert tb == B or tb % 8 == 0, "batch_tile must be a multiple of 8 (sublane rule)"
    grid = (B // tb,)

    tile_bytes = 2 * (tb * d0 * 2 + tb * p3 * 4) + 2 * tb * (p1 + p2 + p3) * 4
    vmem_limit = min(int(resident_bytes + tile_bytes + (4 << 20)), cap)

    cost = pl.CostEstimate(
        flops=2 * B * (d0 * p1 + p1 * p2 + p2 * p3),
        transcendentals=0,
        bytes_accessed=B * d0 * 2 + w_bytes + b_bytes + B * p3 * 4,
    )

    # TODO(synk): if layer widths grow beyond toy sizes (>=2048), add a K-tiling grid axis
    # with a f32 VMEM accumulator + pl.when init/finalize, and re-derive the tile sizes
    # against v7x's 64 MiB VMEM via pltpu.get_tpu_info() rather than assuming 128 MiB.
    in_specs = [
        pl.BlockSpec((tb, d0), lambda i: (i, 0)),  # x tile (unpadded feature dim)
        _resident_spec((d0, p1)),                  # w1
        _resident_spec((1, p1)),                   # b1
        _resident_spec((p1, p2)),                  # w2
        _resident_spec((1, p2)),                   # b2
        _resident_spec((p2, p3)),                  # w3
        _resident_spec((1, p3)),                   # b3
    ]
    out_spec = pl.BlockSpec((tb, p3), lambda i: (i, 0))

    # With a single grid step there is nothing to shard; only mark the batch axis
    # parallel when there are multiple steps (v7x 2-TC split).
    semantics = ("parallel",) if grid[0] > 1 else ("arbitrary",)

    out_padded = pl.pallas_call(
        _mlp_kernel,
        out_shape=jax.ShapeDtypeStruct((B, p3), jnp.float32),
        grid_spec=pltpu.PrefetchScalarGridSpec(
            num_scalar_prefetch=0,
            grid=grid,
            in_specs=in_specs,
            out_specs=out_spec,
        ),
        compiler_params=pltpu.CompilerParams(
            dimension_semantics=semantics,
            vmem_limit_bytes=vmem_limit,
        ),
        cost_estimate=cost,
    )(xp, w1, b1, w2, b2, w3, b3)

    return out_padded[:, :out_features].astype(x.dtype)


def init_linear_net_params(key, layers):
    """Deterministic init mimicking PyTorch nn.Linear (uniform(+-1/sqrt(fan_in))).

    Weights are returned already transposed to (in_features, out_features).
    Biases are (1, out_features) for 2-D TPU-friendly layout.
    """
    params = {}
    names = [("w1", "b1"), ("w2", "b2"), ("w3", "b3")]
    for idx, (wn, bn) in enumerate(names):
        fan_in, fan_out = layers[idx], layers[idx + 1]
        key, kw, kb = jax.random.split(key, 3)
        bound = 1.0 / (fan_in ** 0.5)
        params[wn] = jax.random.uniform(
            kw, (fan_in, fan_out), minval=-bound, maxval=bound, dtype=jnp.float32)
        params[bn] = jax.random.uniform(
            kb, (1, fan_out), minval=-bound, maxval=bound, dtype=jnp.float32)
    return params


def _reference_forward(x, params):
    # Precision-matched reference: bf16 matmul inputs, f32 accumulate, f32 bias/ReLU.
    def mm(a, w):
        return jnp.dot(a.astype(jnp.bfloat16), w.astype(jnp.bfloat16),
                       preferred_element_type=jnp.float32)
    h = jnp.maximum(mm(x, params["w1"]) + params["b1"], 0.0)
    h = jnp.maximum(mm(h, params["w2"]) + params["b2"], 0.0)
    return mm(h, params["w3"]) + params["b3"]


if __name__ == "__main__":
    # Small shapes consistent with LinearNet(layers=[32, 64, 64, 16]).
    layers = [32, 64, 64, 16]
    B = 64

    key = jax.random.PRNGKey(0)
    key, kx = jax.random.split(key)
    x = jax.random.normal(kx, (B, layers[0]), dtype=jnp.float32)
    params = init_linear_net_params(key, layers)

    prepared = jax.tree_util.tree_map(jax.block_until_ready, prepare_params(params))

    out = linear_net_forward(x, prepared, out_features=layers[-1])
    out = jax.block_until_ready(out)

    ref = _reference_forward(x, params)
    assert out.shape == (B, layers[-1])
    assert jnp.allclose(out, ref.astype(out.dtype), atol=2e-3, rtol=2e-3), "mismatch vs reference"

    print("KERNEL_OK")
</pallas_src>

<mosaic_0001>
module attributes {stable_mosaic.version = 11 : i64} {
  func.func @_mlp_kernel(%arg0: i32, %arg1: memref<64x32xbf16, #tpu.memory_space<vmem>>, %arg2: memref<32x128xbf16, #tpu.memory_space<vmem>>, %arg3: memref<1x128xf32, #tpu.memory_space<vmem>>, %arg4: memref<128x128xbf16, #tpu.memory_space<vmem>>, %arg5: memref<1x128xf32, #tpu.memory_space<vmem>>, %arg6: memref<128x128xbf16, #tpu.memory_space<vmem>>, %arg7: memref<1x128xf32, #tpu.memory_space<vmem>>, %arg8: memref<64x128xf32, #tpu.memory_space<vmem>>) attributes {dimension_semantics = [#tpu.dimension_semantics<arbitrary>], iteration_bounds = array<i64: 1>, scalar_prefetch = 0 : i64, scratch_operands = 0 : i64, tpu.core_type = #tpu.core_type<tc>, window_params = [{transform_indices = @transform_0, window_bounds = array<i64: 64, 32>}, {pipeline_mode = #tpu.pipeline_mode<synchronous>, transform_indices = @transform_1, window_bounds = array<i64: 32, 128>}, {pipeline_mode = #tpu.pipeline_mode<synchronous>, transform_indices = @transform_2, window_bounds = array<i64: 1, 128>}, {pipeline_mode = #tpu.pipeline_mode<synchronous>, transform_indices = @transform_3, window_bounds = array<i64: 128, 128>}, {pipeline_mode = #tpu.pipeline_mode<synchronous>, transform_indices = @transform_4, window_bounds = array<i64: 1, 128>}, {pipeline_mode = #tpu.pipeline_mode<synchronous>, transform_indices = @transform_5, window_bounds = array<i64: 128, 128>}, {pipeline_mode = #tpu.pipeline_mode<synchronous>, transform_indices = @transform_6, window_bounds = array<i64: 1, 128>}, {transform_indices = @transform_7, window_bounds = array<i64: 64, 128>}]} {
    %c0 = arith.constant 0 : index
    %c0_0 = arith.constant 0 : index
    %0 = vector.load %arg1[%c0, %c0_0] : memref<64x32xbf16, #tpu.memory_space<vmem>>, vector<64x32xbf16>
    %c0_1 = arith.constant 0 : index
    %c0_2 = arith.constant 0 : index
    %1 = vector.load %arg2[%c0_1, %c0_2] : memref<32x128xbf16, #tpu.memory_space<vmem>>, vector<32x128xbf16>
    %cst = arith.constant dense<0.000000e+00> : vector<64x128xf32>
    %2 = tpu.matmul %0, %1, %cst {dimension_numbers = #tpu.dot_dimension_numbers<[1], [0], [0], [1], [0, 0, 1, 1], [], []>} : vector<64x32xbf16>, vector<32x128xbf16>, vector<64x128xf32> -> vector<64x128xf32>
    %c0_3 = arith.constant 0 : index
    %c0_4 = arith.constant 0 : index
    %3 = vector.load %arg3[%c0_3, %c0_4] : memref<1x128xf32, #tpu.memory_space<vmem>>, vector<1x128xf32>
    %4 = vector.broadcast %3 : vector<1x128xf32> to vector<64x128xf32>
    %5 = arith.addf %2, %4 : vector<64x128xf32>
    %cst_5 = arith.constant 0.000000e+00 : f32
    %6 = vector.broadcast %cst_5 : f32 to vector<64x128xf32>
    %7 = arith.maximumf %5, %6 : vector<64x128xf32>
    %8 = arith.truncf %7 : vector<64x128xf32> to vector<64x128xbf16>
    %c0_6 = arith.constant 0 : index
    %c0_7 = arith.constant 0 : index
    %9 = vector.load %arg4[%c0_6, %c0_7] : memref<128x128xbf16, #tpu.memory_space<vmem>>, vector<128x128xbf16>
    %cst_8 = arith.constant dense<0.000000e+00> : vector<64x128xf32>
    %10 = tpu.matmul %8, %9, %cst_8 {dimension_numbers = #tpu.dot_dimension_numbers<[1], [0], [0], [1], [0, 0, 1, 1], [], []>} : vector<64x128xbf16>, vector<128x128xbf16>, vector<64x128xf32> -> vector<64x128xf32>
    %c0_9 = arith.constant 0 : index
    %c0_10 = arith.constant 0 : index
    %11 = vector.load %arg5[%c0_9, %c0_10] : memref<1x128xf32, #tpu.memory_space<vmem>>, vector<1x128xf32>
    %12 = vector.broadcast %11 : vector<1x128xf32> to vector<64x128xf32>
    %13 = arith.addf %10, %12 : vector<64x128xf32>
    %cst_11 = arith.constant 0.000000e+00 : f32
    %14 = vector.broadcast %cst_11 : f32 to vector<64x128xf32>
    %15 = arith.maximumf %13, %14 : vector<64x128xf32>
    %16 = arith.truncf %15 : vector<64x128xf32> to vector<64x128xbf16>
    %c0_12 = arith.constant 0 : index
    %c0_13 = arith.constant 0 : index
    %17 = vector.load %arg6[%c0_12, %c0_13] : memref<128x128xbf16, #tpu.memory_space<vmem>>, vector<128x128xbf16>
    %cst_14 = arith.constant dense<0.000000e+00> : vector<64x128xf32>
    %18 = tpu.matmul %16, %17, %cst_14 {dimension_numbers = #tpu.dot_dimension_numbers<[1], [0], [0], [1], [0, 0, 1, 1], [], []>} : vector<64x128xbf16>, vector<128x128xbf16>, vector<64x128xf32> -> vector<64x128xf32>
    %c0_15 = arith.constant 0 : index
    %c0_16 = arith.constant 0 : index
    %19 = vector.load %arg7[%c0_15, %c0_16] : memref<1x128xf32, #tpu.memory_space<vmem>>, vector<1x128xf32>
    %20 = vector.broadcast %19 : vector<1x128xf32> to vector<64x128xf32>
    %21 = arith.addf %18, %20 : vector<64x128xf32>
    %c0_17 = arith.constant 0 : index
    %c0_18 = arith.constant 0 : index
    %22 = vector.load %arg8[%c0_17, %c0_18] : memref<64x128xf32, #tpu.memory_space<vmem>>, vector<64x128xf32>
    tpu.vector_store %arg8[%c0_17, %c0_18], %21 {strides = array<i32>} : memref<64x128xf32, #tpu.memory_space<vmem>>, vector<64x128xf32>,
    return
  }
  func.func @transform_0(%arg0: i32) -> (i32, i32) {
    %c0_i32 = arith.constant 0 : i32
    %c0_i32_0 = arith.constant 0 : i32
    return %arg0, %c0_i32 : i32, i32
  }
  func.func @transform_1(%arg0: i32) -> (i32, i32) {
    %c0_i32 = arith.constant 0 : i32
    %c0_i32_0 = arith.constant 0 : i32
    %c0_i32_1 = arith.constant 0 : i32
    return %c0_i32, %c0_i32_0 : i32, i32
  }
  func.func @transform_2(%arg0: i32) -> (i32, i32) {
    %c0_i32 = arith.constant 0 : i32
    %c0_i32_0 = arith.constant 0 : i32
    %c0_i32_1 = arith.constant 0 : i32
    return %c0_i32, %c0_i32_0 : i32, i32
  }
  func.func @transform_3(%arg0: i32) -> (i32, i32) {
    %c0_i32 = arith.constant 0 : i32
    %c0_i32_0 = arith.constant 0 : i32
    %c0_i32_1 = arith.constant 0 : i32
    return %c0_i32, %c0_i32_0 : i32, i32
  }
  func.func @transform_4(%arg0: i32) -> (i32, i32) {
    %c0_i32 = arith.constant 0 : i32
    %c0_i32_0 = arith.constant 0 : i32
    %c0_i32_1 = arith.constant 0 : i32
    return %c0_i32, %c0_i32_0 : i32, i32
  }
  func.func @transform_5(%arg0: i32) -> (i32, i32) {
    %c0_i32 = arith.constant 0 : i32
    %c0_i32_0 = arith.constant 0 : i32
    %c0_i32_1 = arith.constant 0 : i32
    return %c0_i32, %c0_i32_0 : i32, i32
  }
  func.func @transform_6(%arg0: i32) -> (i32, i32) {
    %c0_i32 = arith.constant 0 : i32
    %c0_i32_0 = arith.constant 0 : i32
    %c0_i32_1 = arith.constant 0 : i32
    return %c0_i32, %c0_i32_0 : i32, i32
  }
  func.func @transform_7(%arg0: i32) -> (i32, i32) {
    %c0_i32 = arith.constant 0 : i32
    %c0_i32_0 = arith.constant 0 : i32
    return %arg0, %c0_i32 : i32, i32
  }
}

</mosaic_0001>

<bundles_post_ra>
// kernel: linear_net_forward.1
= control target key start
LH: loop header
LB: loop body
LE: loop exit
PB: predicated region body
PF: predicated region fallthrough
CT: control target
= control target key end

     0   :  { %12 = vsyncpa [#allocation3], 0  ;;  %s647_s24 = smov [#allocation2]   ;;  %s781_s0 = inlined_call_operand.vmem [shape: bf16[64,32], index: 0, kind: input, shape index: {}]   ;;  %s782_s1 = inlined_call_operand.vmem [shape: bf16[32,128], index: 1, kind: input, shape index: {}]   ;;  %s783_s2 = inlined_call_operand.vmem [shape: f32[1,128], index: 2, kind: input, shape index: {}]   ;;  %s784_s3 = inlined_call_operand.vmem [shape: bf16[128,128], index: 3, kind: input, shape index: {}]   ;;  %s785_s4 = inlined_call_operand.vmem [shape: f32[1,128], index: 4, kind: input, shape index: {}]   ;;  %s786_s5 = inlined_call_operand.hbm [shape: bf16[128,128], index: 5, kind: input, shape index: {}]   ;;  %s787_s6 = inlined_call_operand.vmem [shape: f32[1,128], index: 6, kind: input, shape index: {}]   ;;  %s788_s7 = inlined_call_operand.vmem [shape: f32[64,128], index: 7, kind: output, shape index: {}]  }
   0x1   :  { %s28_s25 = sshll.u32 %s647_s24, 4  ;;  %s623_s28 = scalar_lea.hbm %s786_s5, 1024  ;;  %s29_s25 = int_to_ptr.vmem [resolvable:$true] %s28_s25 }
   0x2   :  { %p624_p0 = scmp.ne.s32.totalorder %s786_s5, %s623_s28  ;;  %p627_p1 = scmp.lt.u32.totalorder %s623_s28, %s786_s5 }
   0x4   :  { %p629_p2 = pnand %p627_p1, %p624_p0 }
   0x6   :  { %632 = shalt.err (!%p629_p2)
}
   0x7   :  { %s633_s10 = scalar_lea.vmem %s29_s25, 1024  ;;  %p638_p4 = scmp.lt.s32.totalorder %s29_s25, %s29_s25 }
   0x8   :  { %p634_p3 = scmp.ne.s32.totalorder %s29_s25, %s633_s10  ;;  %p639_p5 = scmp.lt.s32.totalorder %s633_s10, %s633_s10 }
   0xa   :  { %p640_p6 = por %p639_p5, %p638_p4 }
   0xc   :  { %p641_p7 = pnand %p640_p6, %p634_p3 }
   0xe   :  { %644 = shalt.err (!%p641_p7)
}
   0xf   :  { %s648_s11 = smov 64   ;;  %s649_s12 = smov 4  }
  0x10   :  { %34 = dma.hbm_to_vmem [thread:$0]  %s786_s5, 1024, %s29_s25, [#allocation3], %s648_s11, %s648_s11, %s649_s12  }
  0x11   :  { %645 = dma.done.wait [#allocation3], 1024  }
  0x12   :  { %646 = vsyncadd [#allocation3], 4294966272  ;;  %v601_v0 = vld [vmem:[%s782_s1] sm:$0xff]   ;;  %v602_v1 = vld [vmem:[%s782_s1 + $0x8] sm:$0xff]   ;;  %vm92_vm0 = vcmask 261120  }
  0x13   :  { %538 = vmatprep.subr.bf16.mxu0 %v601_v0  ;;  %v603_v2 = vld [vmem:[%s781_s0] sm:$0xff]   ;;  %v604_v3 = vld [vmem:[%s781_s0 + $0x8] sm:$0xff]   ;;  %v605_v4 = vld [vmem:[%s781_s0 + $0x10] sm:$0xff]  }
  0x14   :  { %539 = vmatpush3.bf16.msra.mxu0 %v601_v0  ;;  %542 = vmatprep.mubr.msk.bf16.mxu0 %vm92_vm0, %v603_v2  ;;  %v607_v5 = vld [vmem:[%s784_s3] sm:$0xff]   ;;  %v608_v6 = vld [vmem:[%s784_s3 + $0x8] sm:$0xff]   ;;  %v609_v7 = vld [vmem:[%s784_s3 + $0x10] sm:$0xff]  }
  0x15   :  { %540 = vmatprep.subr.bf16.mxu0 %v602_v1  ;;  %550 = vmatprep.subr.bf16.mxu1 %v607_v5  ;;  %v606_v8 = vld [vmem:[%s781_s0 + $0x18] sm:$0xff]   ;;  %v611_v10 = vld [vmem:[%s784_s3 + $0x20] sm:$0xff]   ;;  %v612_v11 = vld [vmem:[%s784_s3 + $0x28] sm:$0xff]  }
  0x16   :  { %551 = vmatpush3.bf16.msra.mxu1 %v607_v5  ;;  %v610_v9 = vld [vmem:[%s784_s3 + $0x18] sm:$0xff]   ;;  %v613_v12 = vld [vmem:[%s784_s3 + $0x30] sm:$0xff]   ;;  %v615_v14 = vld [vmem:[#allocation2] sm:$0xff]  }
  0x17   :  { %552 = vmatprep.subr.bf16.mxu1 %v608_v6  ;;  %v614_v13 = vld [vmem:[%s784_s3 + $0x38] sm:$0xff]   ;;  %v616_v15 = vld [vmem:[#allocation2 + $0x8] sm:$0xff]   ;;  %v617_v16 = vld [vmem:[#allocation2 + $0x10] sm:$0xff]  }
  0x18   :  { %541 = vmatpush3.bf16.msra.mxu0 %v602_v1  ;;  %v618_v17 = vld [vmem:[#allocation2 + $0x18] sm:$0xff]   ;;  %v619_v18 = vld [vmem:[#allocation2 + $0x20] sm:$0xff]   ;;  %v620_v19 = vld [vmem:[#allocation2 + $0x28] sm:$0xff]  }
  0x19   :  { %574 = vmatprep.subr.bf16.mxu0 %v615_v14  ;;  %v479_v20 = vld [vmem:[%s783_s2] ss:$0 sm:$0xff]  ;;  %v621_v49 = vld [vmem:[#allocation2 + $0x30] sm:$0xff]   ;;  %v622_v50 = vld [vmem:[#allocation2 + $0x38] sm:$0xff]  }
  0x1a   :  { %553 = vmatpush3.bf16.msra.mxu1 %v608_v6  ;;  %v490_v51 = vld [vmem:[%s785_s4] ss:$0 sm:$0xff] }
  0x1b   :  { %543 = vmatmul.mubr.msk.bf16.vlgmr.msra.gmra.mrb[0].mxu0 %vm92_vm0, %v604_v3  ;;  %554 = vmatprep.subr.bf16.mxu1 %v609_v7 }
  0x1c   :  { %546 = vmatprep.mubr.msk.bf16.mxu0 %vm92_vm0, %v605_v4  ;;  %575 = vmatpush3.bf16.msra.mxu0 %v615_v14 }
  0x1d   :  { %576 = vmatprep.subr.bf16.mxu0 %v616_v15 }
  0x1e   :  { %555 = vmatpush3.bf16.msra.mxu1 %v609_v7 }
  0x1f   :  { %556 = vmatprep.subr.bf16.mxu1 %v610_v9 }
  0x20   :  { %577 = vmatpush3.bf16.msra.mxu0 %v616_v15 }
  0x21   :  { %578 = vmatprep.subr.bf16.mxu0 %v617_v16 }
  0x22   :  { %557 = vmatpush3.bf16.msra.mxu1 %v610_v9 }
  0x23   :  { %547 = vmatmul.mubr.msk.bf16.gmra.mrb[4].mxu0 %vm92_vm0, %v606_v8  ;;  %558 = vmatprep.subr.bf16.mxu1 %v611_v10 }
  0x24   :  { %579 = vmatpush3.bf16.msra.mxu0 %v617_v16  ;;  %v499_v16 = vld [vmem:[%s787_s6] ss:$0 sm:$0xff] }
  0x25   :  { %580 = vmatprep.subr.bf16.mxu0 %v618_v17 }
  0x26   :  { %559 = vmatpush3.bf16.msra.mxu1 %v611_v10 }
  0x27   :  { %560 = vmatprep.subr.bf16.mxu1 %v612_v11 }
  0x28   :  { %581 = vmatpush3.bf16.msra.mxu0 %v618_v17 }
  0x29   :  { %582 = vmatprep.subr.bf16.mxu0 %v619_v18 }
  0x2a   :  { %561 = vmatpush3.bf16.msra.mxu1 %v612_v11 }
  0x2b   :  { %562 = vmatprep.subr.bf16.mxu1 %v613_v12 }
  0x2c   :  { %583 = vmatpush3.bf16.msra.mxu0 %v619_v18 }
  0x2d   :  { %584 = vmatprep.subr.bf16.mxu0 %v620_v19 }
  0x2e   :  { %563 = vmatpush3.bf16.msra.mxu1 %v613_v12 }
  0x2f   :  { %564 = vmatprep.subr.bf16.mxu1 %v614_v13 }
  0x30   :  { %585 = vmatpush3.bf16.msra.mxu0 %v620_v19 }
  0x31   :  { %586 = vmatprep.subr.bf16.mxu0 %v621_v49 }
  0x32   :  { %565 = vmatpush3.bf16.msra.mxu1 %v614_v13 }
  0x34   :  { %587 = vmatpush3.bf16.msra.mxu0 %v621_v49 }
  0x35   :  { %588 = vmatprep.subr.bf16.mxu0 %v622_v50 }
  0x38   :  { %589 = vmatpush3.bf16.msra.mxu0 %v622_v50 }
  0xee   :  { %v544_v21 = vpop.f32.mrb[0].mxu0 }
  0xef   :  { %v148_v22 = vadd.f32 %v544_v21, %v479_v20  ;;  %v139_v23 = vpop.f32.mrb[1].mxu0 }
  0xf0   :  { %v140_v24 = vadd.f32 %v479_v20, %v139_v23  ;;  %v545_v25 = vpop.f32.mrb[2].mxu0 }
  0xf1   :  { %v151_v26 = vadd.f32 %v545_v25, %v479_v20  ;;  %v142_v27 = vpop.f32.mrb[3].mxu0  ;;  %v172_v29 = vmax.f32 %v148_v22, 0.0 }
  0xf2   :  { %v143_v28 = vadd.f32 %v479_v20, %v142_v27  ;;  %v170_v31 = vmax.f32 %v140_v24, 0.0 }
  0xf3   :  { %v173_v30 = vmax.f32 %v151_v26, 0.0 }
  0xf4   :  { %v171_v32 = vmax.f32 %v143_v28, 0.0 }
  0xf5   :  { %v179_v33 = vpack.c.bf16 %v173_v30, %v172_v29 }
  0xf6   :  { %v548_v34 = vpop.f32.mrb[4].mxu0  ;;  %v178_v35 = vpack.c.bf16 %v171_v32, %v170_v31 }
  0xf7   :  { %v164_v36 = vadd.f32 %v548_v34, %v479_v20  ;;  %v155_v37 = vpop.f32.mrb[5].mxu0 }
  0xf8   :  { %v156_v38 = vadd.f32 %v479_v20, %v155_v37  ;;  %v549_v39 = vpop.f32.mrb[6].mxu0  ;;  %566 = vmatprep.mubr.bf16.mxu1 %v178_v35 }
  0xf9   :  { %v167_v40 = vadd.f32 %v549_v39, %v479_v20  ;;  %v158_v41 = vpop.f32.mrb[7].mxu0  ;;  %567 = vmatmul.mubr.bf16.vlgmr.msra.gmra.mrb[0].mxu1 %v179_v33  ;;  %v176_v43 = vmax.f32 %v164_v36, 0.0 }
  0xfa   :  { %v159_v42 = vadd.f32 %v479_v20, %v158_v41  ;;  %v174_v45 = vmax.f32 %v156_v38, 0.0 }
  0xfb   :  { %v177_v44 = vmax.f32 %v167_v40, 0.0 }
  0xfc   :  { %v175_v46 = vmax.f32 %v159_v42, 0.0 }
  0xfd   :  { %v181_v47 = vpack.c.bf16 %v177_v44, %v176_v43 }
  0xfe   :  { %v180_v48 = vpack.c.bf16 %v175_v46, %v174_v45 }
 0x100   :  { %570 = vmatprep.mubr.bf16.mxu1 %v180_v48 }
 0x101   :  { %571 = vmatmul.mubr.bf16.gmra.mrb[4].mxu1 %v181_v47 }
 0x1cc   :  { %v568_v52 = vpop.f32.mrb[0].mxu1 }
 0x1cd   :  { %v296_v53 = vadd.f32 %v568_v52, %v490_v51  ;;  %v287_v54 = vpop.f32.mrb[1].mxu1 }
 0x1ce   :  { %v288_v55 = vadd.f32 %v490_v51, %v287_v54  ;;  %v569_v56 = vpop.f32.mrb[2].mxu1 }
 0x1cf   :  { %v299_v57 = vadd.f32 %v569_v56, %v490_v51  ;;  %v290_v58 = vpop.f32.mrb[3].mxu1  ;;  %v320_v60 = vmax.f32 %v296_v53, 0.0 }
 0x1d0   :  { %v291_v59 = vadd.f32 %v490_v51, %v290_v58  ;;  %v318_v62 = vmax.f32 %v288_v55, 0.0 }
 0x1d1   :  { %v321_v61 = vmax.f32 %v299_v57, 0.0 }
 0x1d2   :  { %v319_v63 = vmax.f32 %v291_v59, 0.0 }
 0x1d3   :  { %v327_v0 = vpack.c.bf16 %v321_v61, %v320_v60 }
 0x1d4   :  { %v326_v1 = vpack.c.bf16 %v319_v63, %v318_v62  ;;  %v572_v2 = vpop.f32.mrb[4].mxu1 }
 0x1d5   :  { %v312_v3 = vadd.f32 %v572_v2, %v490_v51  ;;  %v303_v4 = vpop.f32.mrb[5].mxu1 }
 0x1d6   :  { %v304_v5 = vadd.f32 %v490_v51, %v303_v4  ;;  %v573_v6 = vpop.f32.mrb[6].mxu1  ;;  %590 = vmatprep.mubr.bf16.mxu0 %v326_v1 }
 0x1d7   :  { %v315_v7 = vadd.f32 %v573_v6, %v490_v51  ;;  %v306_v8 = vpop.f32.mrb[7].mxu1  ;;  %591 = vmatmul.mubr.bf16.vlgmr.msra.gmra.mrb[8].mxu0 %v327_v0  ;;  %v324_v10 = vmax.f32 %v312_v3, 0.0 }
 0x1d8   :  { %v307_v9 = vadd.f32 %v490_v51, %v306_v8  ;;  %v322_v12 = vmax.f32 %v304_v5, 0.0 }
 0x1d9   :  { %v325_v11 = vmax.f32 %v315_v7, 0.0 }
 0x1da   :  { %v323_v13 = vmax.f32 %v307_v9, 0.0 }
 0x1db   :  { %v329_v14 = vpack.c.bf16 %v325_v11, %v324_v10 }
 0x1dc   :  { %v328_v15 = vpack.c.bf16 %v323_v13, %v322_v12 }
 0x1de   :  { %594 = vmatprep.mubr.bf16.mxu0 %v328_v15 }
 0x1df   :  { %595 = vmatmul.mubr.bf16.gmra.mrb[12].mxu0 %v329_v14 }
 0x2aa   :  { %v592_v17 = vpop.f32.mrb[8].mxu0 }
 0x2ab   :  { %v444_v18 = vadd.f32 %v592_v17, %v499_v16  ;;  %v435_v19 = vpop.f32.mrb[9].mxu0 }
 0x2ac   :  { %v436_v20 = vadd.f32 %v499_v16, %v435_v19  ;;  %v593_v21 = vpop.f32.mrb[10].mxu0 }
 0x2ad   :  { %468 = vst [vmem:[%s788_s7 + $0x10] sm:$0xff] %v444_v18  ;;  %v447_v22 = vadd.f32 %v593_v21, %v499_v16  ;;  %v438_v23 = vpop.f32.mrb[11].mxu0 }
 0x2ae   :  { %466 = vst [vmem:[%s788_s7] sm:$0xff] %v436_v20  ;;  %v439_v24 = vadd.f32 %v499_v16, %v438_v23 }
 0x2af   :  { %469 = vst [vmem:[%s788_s7 + $0x18] sm:$0xff] %v447_v22 }
 0x2b0   :  { %467 = vst [vmem:[%s788_s7 + $0x8] sm:$0xff] %v439_v24 }
 0x2b2   :  { %v596_v25 = vpop.f32.mrb[12].mxu0 }
 0x2b3   :  { %v460_v26 = vadd.f32 %v596_v25, %v499_v16  ;;  %v451_v27 = vpop.f32.mrb[13].mxu0 }
 0x2b4   :  { %v452_v28 = vadd.f32 %v499_v16, %v451_v27  ;;  %v597_v29 = vpop.f32.mrb[14].mxu0 }
 0x2b5   :  { %472 = vst [vmem:[%s788_s7 + $0x30] sm:$0xff] %v460_v26  ;;  %v463_v30 = vadd.f32 %v597_v29, %v499_v16  ;;  %v454_v31 = vpop.f32.mrb[15].mxu0 }
 0x2b6   :  { %470 = vst [vmem:[%s788_s7 + $0x20] sm:$0xff] %v452_v28  ;;  %v455_v32 = vadd.f32 %v499_v16, %v454_v31 }
 0x2b7   :  { %473 = vst [vmem:[%s788_s7 + $0x38] sm:$0xff] %v463_v30 }
 0x2b8   :  { %471 = vst [vmem:[%s788_s7 + $0x28] sm:$0xff] %v455_v32 }
 0x2b9   :  { %478 = vsyncpa [#allocation3], 1 }

</bundles_post_ra>
